<compile_context>
chip_gen: v7x
topology: tpu7x:2x2x1
jax: 0.10.0
libtpu: 0.0.40
codegen_flags: <defaults>
</compile_context>

<pallas_src>
import jax
import jax.numpy as jnp
from jax.experimental import pallas as pl
from jax.experimental.pallas import tpu as pltpu

# PyTorch nn.Softplus defaults
_BETA = 1.0
_THRESHOLD = 20.0

_LANE = 128
# Row quantum 32 covers the sublane tile of f32 (8), bf16 (16) and 8-bit (32).
_ROW_QUANTUM = 32
_ELEM_QUANTUM = _ROW_QUANTUM * _LANE
# ~8 MiB per block: in + out, double-buffered => ~32 MiB VMEM footprint.
_TARGET_BLOCK_BYTES = 8 * 1024 * 1024
# Above v5e's 16 MiB scoped default, below v7x's 64 MiB physical VMEM.
_VMEM_LIMIT_BYTES = 48 * 1024 * 1024
# Below this, launch overhead dominates: let XLA's fused max handle it.
_BYPASS_BYTES = 256 * 1024


def _round_up(v: int, m: int) -> int:
    return ((v + m - 1) // m) * m


def _relu_kernel(x_ref, o_ref):
    # Forward value of softplus(x) + (relu(x) - softplus(x)).detach() is
    # relu(x): no transcendentals needed (gradient lives in the custom_vjp).
    o_ref[...] = jnp.maximum(x_ref[...], 0.0)


def _pick_block(total_units: int, unit_bytes: int, quantum: int) -> int:
    """Largest block (in units) within ~_TARGET_BLOCK_BYTES, rounded to the
    tile quantum.  If everything would fit in a single block, split roughly
    in half so the grid keeps >= 2 steps (v7x megacore sharding)."""
    target = max(quantum, (_TARGET_BLOCK_BYTES // unit_bytes) // quantum * quantum)
    if total_units > target:
        return target
    return min(_round_up((total_units + 1) // 2, quantum), target)


def _relu_slab_2d(slab: jax.Array) -> jax.Array:
    """Lane-dense (rows, 128) streaming path: unmasked vld/vst at roofline."""
    rows = slab.shape[0]
    itemsize = jnp.dtype(slab.dtype).itemsize
    block_rows = _pick_block(rows, _LANE * itemsize, _ROW_QUANTUM)
    grid = (pl.cdiv(rows, block_rows),)
    return pl.pallas_call(
        _relu_kernel,
        out_shape=jax.ShapeDtypeStruct(slab.shape, slab.dtype),
        grid_spec=pltpu.PrefetchScalarGridSpec(
            num_scalar_prefetch=0,
            grid=grid,
            in_specs=[pl.BlockSpec((block_rows, _LANE), lambda i: (i, 0))],
            out_specs=pl.BlockSpec((block_rows, _LANE), lambda i: (i, 0)),
        ),
        compiler_params=pltpu.CompilerParams(
            dimension_semantics=("parallel",),
            vmem_limit_bytes=_VMEM_LIMIT_BYTES,
        ),
    )(slab)


def _relu_flat_1d(flat: jax.Array) -> jax.Array:
    """Ragged path: stream the flat array with a lane-multiple 1-D block.
    Pallas masks the ragged final grid step — no jnp.pad / trailing slice,
    so no extra HBM round-trips."""
    n = flat.shape[0]
    itemsize = jnp.dtype(flat.dtype).itemsize
    block = _pick_block(n, itemsize, _ELEM_QUANTUM)
    grid = (pl.cdiv(n, block),)
    return pl.pallas_call(
        _relu_kernel,
        out_shape=jax.ShapeDtypeStruct(flat.shape, flat.dtype),
        grid_spec=pltpu.PrefetchScalarGridSpec(
            num_scalar_prefetch=0,
            grid=grid,
            in_specs=[pl.BlockSpec((block,), lambda i: (i,))],
            out_specs=pl.BlockSpec((block,), lambda i: (i,)),
        ),
        compiler_params=pltpu.CompilerParams(
            dimension_semantics=("parallel",),
            vmem_limit_bytes=_VMEM_LIMIT_BYTES,
        ),
    )(flat)


def _forward_value(x: jax.Array) -> jax.Array:
    nbytes = x.size * jnp.dtype(x.dtype).itemsize
    if x.size == 0 or nbytes < _BYPASS_BYTES:
        # Tiny / empty tensors: kernel launch overhead dominates; XLA's fused
        # elementwise max is already at roofline here.
        return jnp.maximum(x, 0.0).astype(x.dtype)
    flat = x.reshape(-1)
    n = flat.shape[0]
    if n % _LANE == 0:
        out = _relu_slab_2d(flat.reshape(n // _LANE, _LANE))
    else:
        out = _relu_flat_1d(flat)
    return out.reshape(x.shape)


@jax.custom_vjp
def relu_softplus_grad(x: jax.Array) -> jax.Array:
    """ReLUSoftPlusGrad forward (value == relu(x), softplus-shaped gradient)."""
    return _forward_value(x)


def _fwd(x):
    return _forward_value(x), x


def _bwd(x, g):
    # PyTorch semantics: gradient flows only through softplus(x) — the
    # (relu_x - softplus_x) term is detached — so d/dx = sigmoid(beta*x),
    # exactly 1 in the linear region (beta*x > threshold).  Computed in f32
    # and cast back for low-precision inputs.
    # TODO(synk): port bwd to a Pallas kernel only if profiling shows the XLA
    # elementwise fusion below the HBM roofline.
    bx = _BETA * x.astype(jnp.float32)
    grad = jnp.where(bx > _THRESHOLD, 1.0, jax.nn.sigmoid(bx)).astype(x.dtype)
    return (g * grad,)


relu_softplus_grad.defvjp(_fwd, _bwd)


def _reference(x):
    # Literal PyTorch math: softplus(x) + (relu(x) - softplus(x)).
    xf = x.astype(jnp.float32)
    bx = _BETA * xf
    sp = jnp.where(bx > _THRESHOLD, xf, jnp.log1p(jnp.exp(bx)) / _BETA)
    relu = jnp.maximum(xf, 0.0)
    return (sp + (relu - sp)).astype(x.dtype)


def _grad_reference(x):
    bx = _BETA * x.astype(jnp.float32)
    return jnp.where(bx > _THRESHOLD, 1.0, jax.nn.sigmoid(bx)).astype(x.dtype)


if __name__ == "__main__":
    key = jax.random.PRNGKey(0)
    k0, k1, k2 = jax.random.split(key, 3)

    # 1) Spec shape (NCHW, small): exercises the small-tensor bypass.
    x0 = jax.random.normal(k0, (2, 4, 16, 16), dtype=jnp.float32) * 3.0
    y0 = jax.block_until_ready(relu_softplus_grad(x0))
    assert y0.shape == x0.shape and y0.dtype == x0.dtype
    assert jnp.allclose(y0, _reference(x0), atol=1e-6, rtol=1e-6)
    g0 = jax.block_until_ready(jax.grad(lambda v: jnp.sum(relu_softplus_grad(v)))(x0))
    assert jnp.allclose(g0, _grad_reference(x0), atol=1e-6, rtol=1e-6)

    # 2) Lane-aligned path: 2-D (rows, 128) Pallas kernel, grid of 2 blocks.
    x1 = jax.random.normal(k1, (2, 4, 128, 128), dtype=jnp.float32) * 3.0
    y1 = jax.block_until_ready(relu_softplus_grad(x1))
    assert y1.shape == x1.shape and y1.dtype == x1.dtype
    assert jnp.allclose(y1, _reference(x1), atol=1e-6, rtol=1e-6)
    g1 = jax.block_until_ready(jax.grad(lambda v: jnp.sum(relu_softplus_grad(v)))(x1))
    assert jnp.allclose(g1, _grad_reference(x1), atol=1e-6, rtol=1e-6)

    # 3) Ragged path (numel % 128 != 0): pad-free 1-D Pallas kernel.
    x2 = jax.random.normal(k2, (3, 3, 97, 101), dtype=jnp.float32) * 3.0
    y2 = jax.block_until_ready(relu_softplus_grad(x2))
    assert y2.shape == x2.shape and y2.dtype == x2.dtype
    assert jnp.allclose(y2, _reference(x2), atol=1e-6, rtol=1e-6)

    # 4) bf16 lane-aligned path: exercises dtype-aware block sizing.
    xb = x1.astype(jnp.bfloat16)
    yb = jax.block_until_ready(relu_softplus_grad(xb))
    assert yb.shape == xb.shape and yb.dtype == xb.dtype
    assert jnp.array_equal(yb, jnp.maximum(xb, 0.0).astype(jnp.bfloat16))

    print("KERNEL_OK")
</pallas_src>

<mosaic_0001>
module attributes {stable_mosaic.version = 11 : i64} {
  func.func @_relu_kernel(%arg0: i32, %arg1: memref<512x128xf32, #tpu.memory_space<vmem>>, %arg2: memref<512x128xf32, #tpu.memory_space<vmem>>) attributes {dimension_semantics = [#tpu.dimension_semantics<parallel>], iteration_bounds = array<i64: 2>, scalar_prefetch = 0 : i64, scratch_operands = 0 : i64, tpu.core_type = #tpu.core_type<tc>, window_params = [{transform_indices = @transform_0, window_bounds = array<i64: 512, 128>}, {transform_indices = @transform_1, window_bounds = array<i64: 512, 128>}]} {
    %c0 = arith.constant 0 : index
    %c0_0 = arith.constant 0 : index
    %0 = vector.load %arg1[%c0, %c0_0] : memref<512x128xf32, #tpu.memory_space<vmem>>, vector<512x128xf32>
    %cst = arith.constant 0.000000e+00 : f32
    %1 = vector.broadcast %cst : f32 to vector<512x128xf32>
    %2 = arith.maximumf %0, %1 : vector<512x128xf32>
    %c0_1 = arith.constant 0 : index
    %c0_2 = arith.constant 0 : index
    %3 = vector.load %arg2[%c0_1, %c0_2] : memref<512x128xf32, #tpu.memory_space<vmem>>, vector<512x128xf32>
    tpu.vector_store %arg2[%c0_1, %c0_2], %2 {strides = array<i32>} : memref<512x128xf32, #tpu.memory_space<vmem>>, vector<512x128xf32>,
    return
  }
  func.func @transform_0(%arg0: i32) -> (i32, i32) {
    %c0_i32 = arith.constant 0 : i32
    %c0_i32_0 = arith.constant 0 : i32
    return %arg0, %c0_i32 : i32, i32
  }
  func.func @transform_1(%arg0: i32) -> (i32, i32) {
    %c0_i32 = arith.constant 0 : i32
    %c0_i32_0 = arith.constant 0 : i32
    return %arg0, %c0_i32 : i32, i32
  }
}

</mosaic_0001>

<bundles_post_ra>
// kernel: tpu_custom_call.1
= control target key start
LH: loop header
LB: loop body
LE: loop exit
PB: predicated region body
PF: predicated region fallthrough
CT: control target
= control target key end

     0   :  { %6 = vsyncpa [#allocation3], 0  ;;  %s895_s0 = inlined_call_operand.hbm [shape: f32[1024,128], index: 0, kind: input, shape index: {}]   ;;  %s896_s1 = inlined_call_operand.hbm [shape: f32[1024,128], index: 1, kind: output, shape index: {}]  }
   0x1   :  { %8 = vsyncpa [#allocation3 + $0x1], 0 }
   0x2   :  { %9 = vsyncpa [#allocation4], 0 }
   0x3   :  { %11 = vsyncpa [#allocation4 + $0x1], 0  ;;  %s596_s6 = smov 0   ;;  %s598_s7 = smov 0  }
   0x4   :  { %s600_s8 = smov 0   ;;  %s602_s9 = smov 0  }
   0x5 LB: > { %s617_s10 = sadd.s32 4294967295, %s578_s9   ;;  %s416_s11 = sadd.s32 4294967294, %s578_s9   ;;  %s578_s9 = sphi %s602_s9, %s909_s9   ;;  %s574_s8 = sphi %s600_s8, %s908_s8   ;;  %s570_s7 = sphi %s598_s7, %s907_s7   ;;  %s566_s6 = sphi %s596_s6, %s906_s6  }
   0x6   : > { %s621_s12 = sadd.s32 1, %s578_s9   ;;  %s24_s13 = sadd.s32 1, %s574_s8 }
   0x7   : > { %s21_s14 = ssub.s32 %s578_s9, %s621_s12  ;;  %p31_p0 = scmp.ne.s32.totalorder %s574_s8, %s570_s7 }
   0x8   : > { %p22_p1 = scmp.eq.s32.totalorder %s21_s14, 0  ;;  %p32_p2 = scmp.eq.s32.totalorder %s578_s9, 0 }
   0x9   : > { %p37_p3 = scmp.ne.s32.totalorder %s570_s7, %s566_s6  ;;  %p38_p4 = scmp.eq.s32.totalorder %s617_s10, 0 }
   0xa   : > { %s633_s15 = scalar_select %p22_p1, %s574_s8, %s24_s13  }
   0xb   : > { %p635_p5 = por %p32_p2, %p31_p0  ;;  %p639_p6 = por %p38_p4, %p37_p3 }
   0xc   : > { %p61_p7 = scmp.eq.s32.totalorder %s617_s10, 1  ;;  %p67_p8 = scmp.eq.s32.totalorder %s416_s11, 1 }
   0xd   : > { %p444_p10 = scmp.lt.s32.totalorder %s578_s9, 2  ;;  %s87_s20 = sand.u32 1, %s574_s8  }
   0xe   : > { %p646_p11 = por %p61_p7, %p31_p0  ;;  %p650_p12 = por %p67_p8, %p37_p3 }
   0xf   : > { %s430_s21 = sshll.u32 %s578_s9, 13  ;;  %s419_s22 = sshll.u32 %s87_s20, 9 }
  0x10   : > { %s900_s18 = scalar_select %p646_p11, 1, 0 }
  0x11   : > { %s901_s19 = scalar_select %p650_p12, 1, 0 }
  0x12   : > { %s659_s25 = scalar_lea.hbm %s895_s0, %s430_s21  ;;  %s91_s26 = scalar_lea.vmem [#allocation2], %s419_s22 }
  0x13   : > { %s98_s27 = sshll.u32 %s91_s26, 4  ;;  %p663_p13 = pnand %p444_p10, %p635_p5  ;;  %s667_s27 = int_to_ptr.vmem [resolvable:$true] %s98_s27 }
  0x14   : > { %s669_s29 = scalar_lea.sflag [#allocation3], %s87_s20  ;;  %s482_s30 = scalar_lea.hbm %s659_s25, 8192 }
  0x15   : > { %p483_p0 = scmp.ne.s32.totalorder %s659_s25, %s482_s30  ;;  %p484_p1 = pneg %p663_p13 }
  0x16   : > { %s487_s4 = scalar_lea.hbm %s895_s0, 16384  ;;  %p488_p4 = scmp.lt.u32.totalorder %s659_s25, %s895_s0 }
  0x17   : > { %p485_p2 = pnand %p484_p1, %p483_p0  ;;  %p489_p5 = scmp.lt.u32.totalorder %s487_s4, %s482_s30 }
  0x18   : > { %p491_p8 = scmp.lt.u32.totalorder %s482_s30, %s659_s25 }
  0x19   : > { %p486_p3 = pneg %p485_p2  ;;  %p490_p7 = por %p489_p5, %p488_p4 }
  0x1b   : > { %p492_p10 = por %p491_p8, %p490_p7 }
  0x1d   : > { %p493_p9 = pnand %p492_p10, %p486_p3 }
  0x1f   : > { %496 = shalt.err (!%p493_p9)
}
  0x20   : > { %s497_s13 = scalar_lea.vmem %s667_s27, 8192  ;;  %s580_s14 = smov [#allocation2]  }
  0x21   : > { %p498_p0 = scmp.ne.s32.totalorder %s667_s27, %s497_s13  ;;  %s502_s16 = sshll.u32 %s580_s14, 4  ;;  %s503_s16 = int_to_ptr.vmem [resolvable:$false] %s502_s16 }
  0x22   : > { %s504_s20 = scalar_lea.vmem %s503_s16, 16384  ;;  %p505_p11 = scmp.lt.s32.totalorder %s667_s27, %s503_s16 }
  0x23   : > { %p500_p2 = pnand %p498_p0, %p484_p1  ;;  %p506_p4 = scmp.lt.s32.totalorder %s504_s20, %s497_s13 }
  0x25   : > { %p501_p12 = pneg %p500_p2  ;;  %p507_p5 = por %p506_p4, %p505_p11 }
  0x27   : > { %p508_p7 = pnand %p507_p5, %p501_p12 }
  0x29   : > { %511 = shalt.err (!%p508_p7)
}
  0x2a   : > { %s581_s21 = smov 128   ;;  %s582_s22 = smov 8  }
  0x2b   : > { %439 = dma.hbm_to_vmem [thread:$0]  (!%p663_p13), %s659_s25, 8192, %s667_s27, %s669_s29, %s581_s21, %s581_s21, %s582_s22  }
  0x2c   : > { %p422_p9 = scmp.ge.s32.totalorder %s578_s9, 1  ;;  %p106_p1 = scmp.lt.s32.totalorder %s578_s9, 3 }
  0x2e   : > { %p107_p3 = pnand %p422_p9, %p106_p1 }
  0x2f   : > { %s700_s23 = sand.u32 (!%p107_p3), 1, %s570_s7  }
  0x30   : > { %110 = sbr.rel (%p107_p3) target bundleno = 112 (0x70), region = 24  ;;  %s423_s24 = sshll.u32 (!%p107_p3), %s700_s23, 9 }
  0x31   : > { %s113_s26 = scalar_lea.sflag (!%p107_p3), [#allocation3], %s700_s23  ;;  %s704_s30 = scalar_lea.vmem (!%p107_p3), [#allocation2], %s423_s24 }
  0x37   : > { %557 = dma.done.wait (%p639_p6), %s113_s26, 8192  }
  0x38   : > { %559 = vsyncadd (%p639_p6), %s113_s26, 4294959104  ;;  %v137_v0 = vld [vmem:[%s704_s30] sm:$0xff]  ;;  %v138_v1 = vld [vmem:[%s704_s30 + $0x8] sm:$0xff]  ;;  %s431_s25 = sshll.u32 %s617_s10, 13  ;;  %s714_s27 = scalar_lea.vmem [#allocation5], %s423_s24 }
  0x39   : > { %v139_v2 = vld [vmem:[%s704_s30 + $0x10] sm:$0xff]  ;;  %s343_s17 = sshll.u32 %s714_s27, 4  ;;  %v201_v3 = vmax.f32 %v137_v0, 0.0  ;;  %v202_v4 = vmax.f32 %v138_v1, 0.0  ;;  %v140_v6 = vld [vmem:[%s704_s30 + $0x18] sm:$0xff]  ;;  %v141_v7 = vld [vmem:[%s704_s30 + $0x20] sm:$0xff]  ;;  %s840_s2 = scalar_lea.hbm %s896_s1, %s431_s25  ;;  %s844_s17 = int_to_ptr.vmem [resolvable:$true] %s343_s17 }
  0x3a   : > { %v203_v5 = vmax.f32 %v139_v2, 0.0  ;;  %v142_v8 = vld [vmem:[%s704_s30 + $0x28] sm:$0xff]  ;;  %v204_v9 = vmax.f32 %v140_v6, 0.0  ;;  %v205_v10 = vmax.f32 %v141_v7, 0.0  ;;  %v143_v12 = vld [vmem:[%s704_s30 + $0x30] sm:$0xff]  ;;  %v144_v13 = vld [vmem:[%s704_s30 + $0x38] sm:$0xff] }
  0x3b   : > { %v206_v11 = vmax.f32 %v142_v8, 0.0  ;;  %v145_v14 = vld [vmem:[%s704_s30 + $0x40] sm:$0xff]  ;;  %265 = vst [vmem:[%s714_s27] sm:$0xff] %v201_v3  ;;  %266 = vst [vmem:[%s714_s27 + $0x8] sm:$0xff] %v202_v4  ;;  %v207_v15 = vmax.f32 %v143_v12, 0.0  ;;  %v208_v16 = vmax.f32 %v144_v13, 0.0  ;;  %v146_v18 = vld [vmem:[%s704_s30 + $0x48] sm:$0xff] }
  0x3c   : > { %267 = vst [vmem:[%s714_s27 + $0x10] sm:$0xff] %v203_v5  ;;  %v209_v17 = vmax.f32 %v145_v14, 0.0  ;;  %v147_v19 = vld [vmem:[%s704_s30 + $0x50] sm:$0xff]  ;;  %v148_v20 = vld [vmem:[%s704_s30 + $0x58] sm:$0xff]  ;;  %268 = vst [vmem:[%s714_s27 + $0x18] sm:$0xff] %v204_v9  ;;  %v210_v21 = vmax.f32 %v146_v18, 0.0 }
  0x3d   : > { %269 = vst [vmem:[%s714_s27 + $0x20] sm:$0xff] %v205_v10  ;;  %270 = vst [vmem:[%s714_s27 + $0x28] sm:$0xff] %v206_v11  ;;  %v211_v22 = vmax.f32 %v147_v19, 0.0  ;;  %v212_v23 = vmax.f32 %v148_v20, 0.0  ;;  %v149_v24 = vld [vmem:[%s704_s30 + $0x60] sm:$0xff]  ;;  %v150_v25 = vld [vmem:[%s704_s30 + $0x68] sm:$0xff] }
  0x3e   : > { %v151_v26 = vld [vmem:[%s704_s30 + $0x70] sm:$0xff]  ;;  %271 = vst [vmem:[%s714_s27 + $0x30] sm:$0xff] %v207_v15  ;;  %272 = vst [vmem:[%s714_s27 + $0x38] sm:$0xff] %v208_v16  ;;  %v213_v27 = vmax.f32 %v149_v24, 0.0  ;;  %v214_v28 = vmax.f32 %v150_v25, 0.0  ;;  %v152_v30 = vld [vmem:[%s704_s30 + $0x78] sm:$0xff] }
  0x3f   : > { %273 = vst [vmem:[%s714_s27 + $0x40] sm:$0xff] %v209_v17  ;;  %v215_v29 = vmax.f32 %v151_v26, 0.0  ;;  %v153_v31 = vld [vmem:[%s704_s30 + $0x80] sm:$0xff]  ;;  %v154_v32 = vld [vmem:[%s704_s30 + $0x88] sm:$0xff]  ;;  %274 = vst [vmem:[%s714_s27 + $0x48] sm:$0xff] %v210_v21  ;;  %v216_v33 = vmax.f32 %v152_v30, 0.0 }
  0x40   : > { %275 = vst [vmem:[%s714_s27 + $0x50] sm:$0xff] %v211_v22  ;;  %276 = vst [vmem:[%s714_s27 + $0x58] sm:$0xff] %v212_v23  ;;  %v217_v34 = vmax.f32 %v153_v31, 0.0  ;;  %v218_v35 = vmax.f32 %v154_v32, 0.0  ;;  %v155_v36 = vld [vmem:[%s704_s30 + $0x90] sm:$0xff]  ;;  %v156_v37 = vld [vmem:[%s704_s30 + $0x98] sm:$0xff] }
  0x41   : > { %v157_v38 = vld [vmem:[%s704_s30 + $0xa0] sm:$0xff]  ;;  %277 = vst [vmem:[%s714_s27 + $0x60] sm:$0xff] %v213_v27  ;;  %278 = vst [vmem:[%s714_s27 + $0x68] sm:$0xff] %v214_v28  ;;  %v219_v39 = vmax.f32 %v155_v36, 0.0  ;;  %v220_v40 = vmax.f32 %v156_v37, 0.0  ;;  %v158_v42 = vld [vmem:[%s704_s30 + $0xa8] sm:$0xff] }
  0x42   : > { %279 = vst [vmem:[%s714_s27 + $0x70] sm:$0xff] %v215_v29  ;;  %v221_v41 = vmax.f32 %v157_v38, 0.0  ;;  %v159_v43 = vld [vmem:[%s704_s30 + $0xb0] sm:$0xff]  ;;  %v160_v44 = vld [vmem:[%s704_s30 + $0xb8] sm:$0xff]  ;;  %280 = vst [vmem:[%s714_s27 + $0x78] sm:$0xff] %v216_v33  ;;  %v222_v45 = vmax.f32 %v158_v42, 0.0 }
  0x43   : > { %281 = vst [vmem:[%s714_s27 + $0x80] sm:$0xff] %v217_v34  ;;  %282 = vst [vmem:[%s714_s27 + $0x88] sm:$0xff] %v218_v35  ;;  %v223_v46 = vmax.f32 %v159_v43, 0.0  ;;  %v224_v47 = vmax.f32 %v160_v44, 0.0  ;;  %v161_v48 = vld [vmem:[%s704_s30 + $0xc0] sm:$0xff]  ;;  %v162_v49 = vld [vmem:[%s704_s30 + $0xc8] sm:$0xff] }
  0x44   : > { %v163_v50 = vld [vmem:[%s704_s30 + $0xd0] sm:$0xff]  ;;  %283 = vst [vmem:[%s714_s27 + $0x90] sm:$0xff] %v219_v39  ;;  %284 = vst [vmem:[%s714_s27 + $0x98] sm:$0xff] %v220_v40  ;;  %v225_v51 = vmax.f32 %v161_v48, 0.0  ;;  %v226_v52 = vmax.f32 %v162_v49, 0.0  ;;  %v164_v54 = vld [vmem:[%s704_s30 + $0xd8] sm:$0xff] }
  0x45   : > { %285 = vst [vmem:[%s714_s27 + $0xa0] sm:$0xff] %v221_v41  ;;  %v227_v53 = vmax.f32 %v163_v50, 0.0  ;;  %v165_v55 = vld [vmem:[%s704_s30 + $0xe0] sm:$0xff]  ;;  %v166_v56 = vld [vmem:[%s704_s30 + $0xe8] sm:$0xff]  ;;  %286 = vst [vmem:[%s714_s27 + $0xa8] sm:$0xff] %v222_v45  ;;  %v228_v57 = vmax.f32 %v164_v54, 0.0 }
  0x46   : > { %287 = vst [vmem:[%s714_s27 + $0xb0] sm:$0xff] %v223_v46  ;;  %288 = vst [vmem:[%s714_s27 + $0xb8] sm:$0xff] %v224_v47  ;;  %v229_v58 = vmax.f32 %v165_v55, 0.0  ;;  %v230_v59 = vmax.f32 %v166_v56, 0.0  ;;  %v167_v60 = vld [vmem:[%s704_s30 + $0xf0] sm:$0xff]  ;;  %v168_v61 = vld [vmem:[%s704_s30 + $0xf8] sm:$0xff] }
  0x47   : > { %v169_v62 = vld [vmem:[%s704_s30 + $0x100] sm:$0xff]  ;;  %289 = vst [vmem:[%s714_s27 + $0xc0] sm:$0xff] %v225_v51  ;;  %290 = vst [vmem:[%s714_s27 + $0xc8] sm:$0xff] %v226_v52  ;;  %v231_v63 = vmax.f32 %v167_v60, 0.0  ;;  %v232_v0 = vmax.f32 %v168_v61, 0.0  ;;  %v170_v2 = vld [vmem:[%s704_s30 + $0x108] sm:$0xff] }
  0x48   : > { %291 = vst [vmem:[%s714_s27 + $0xd0] sm:$0xff] %v227_v53  ;;  %v233_v1 = vmax.f32 %v169_v62, 0.0  ;;  %v171_v3 = vld [vmem:[%s704_s30 + $0x110] sm:$0xff]  ;;  %v172_v4 = vld [vmem:[%s704_s30 + $0x118] sm:$0xff]  ;;  %292 = vst [vmem:[%s714_s27 + $0xd8] sm:$0xff] %v228_v57  ;;  %v234_v5 = vmax.f32 %v170_v2, 0.0 }
  0x49   : > { %293 = vst [vmem:[%s714_s27 + $0xe0] sm:$0xff] %v229_v58  ;;  %294 = vst [vmem:[%s714_s27 + $0xe8] sm:$0xff] %v230_v59  ;;  %v235_v6 = vmax.f32 %v171_v3, 0.0  ;;  %v236_v7 = vmax.f32 %v172_v4, 0.0  ;;  %v173_v8 = vld [vmem:[%s704_s30 + $0x120] sm:$0xff]  ;;  %v174_v9 = vld [vmem:[%s704_s30 + $0x128] sm:$0xff] }
  0x4a   : > { %v175_v10 = vld [vmem:[%s704_s30 + $0x130] sm:$0xff]  ;;  %295 = vst [vmem:[%s714_s27 + $0xf0] sm:$0xff] %v231_v63  ;;  %296 = vst [vmem:[%s714_s27 + $0xf8] sm:$0xff] %v232_v0  ;;  %v237_v11 = vmax.f32 %v173_v8, 0.0  ;;  %v238_v12 = vmax.f32 %v174_v9, 0.0  ;;  %v176_v14 = vld [vmem:[%s704_s30 + $0x138] sm:$0xff] }
  0x4b   : > { %297 = vst [vmem:[%s714_s27 + $0x100] sm:$0xff] %v233_v1  ;;  %v239_v13 = vmax.f32 %v175_v10, 0.0  ;;  %v177_v15 = vld [vmem:[%s704_s30 + $0x140] sm:$0xff]  ;;  %v178_v16 = vld [vmem:[%s704_s30 + $0x148] sm:$0xff]  ;;  %298 = vst [vmem:[%s714_s27 + $0x108] sm:$0xff] %v234_v5  ;;  %v240_v17 = vmax.f32 %v176_v14, 0.0 }
  0x4c   : > { %299 = vst [vmem:[%s714_s27 + $0x110] sm:$0xff] %v235_v6  ;;  %300 = vst [vmem:[%s714_s27 + $0x118] sm:$0xff] %v236_v7  ;;  %v241_v18 = vmax.f32 %v177_v15, 0.0  ;;  %v242_v19 = vmax.f32 %v178_v16, 0.0  ;;  %v179_v20 = vld [vmem:[%s704_s30 + $0x150] sm:$0xff]  ;;  %v180_v21 = vld [vmem:[%s704_s30 + $0x158] sm:$0xff] }
  0x4d   : > { %v181_v22 = vld [vmem:[%s704_s30 + $0x160] sm:$0xff]  ;;  %301 = vst [vmem:[%s714_s27 + $0x120] sm:$0xff] %v237_v11  ;;  %302 = vst [vmem:[%s714_s27 + $0x128] sm:$0xff] %v238_v12  ;;  %v243_v23 = vmax.f32 %v179_v20, 0.0  ;;  %v244_v24 = vmax.f32 %v180_v21, 0.0  ;;  %v182_v26 = vld [vmem:[%s704_s30 + $0x168] sm:$0xff] }
  0x4e   : > { %303 = vst [vmem:[%s714_s27 + $0x130] sm:$0xff] %v239_v13  ;;  %v245_v25 = vmax.f32 %v181_v22, 0.0  ;;  %v183_v27 = vld [vmem:[%s704_s30 + $0x170] sm:$0xff]  ;;  %v184_v28 = vld [vmem:[%s704_s30 + $0x178] sm:$0xff]  ;;  %304 = vst [vmem:[%s714_s27 + $0x138] sm:$0xff] %v240_v17  ;;  %v246_v29 = vmax.f32 %v182_v26, 0.0 }
  0x4f   : > { %305 = vst [vmem:[%s714_s27 + $0x140] sm:$0xff] %v241_v18  ;;  %306 = vst [vmem:[%s714_s27 + $0x148] sm:$0xff] %v242_v19  ;;  %v247_v30 = vmax.f32 %v183_v27, 0.0  ;;  %v248_v31 = vmax.f32 %v184_v28, 0.0  ;;  %v185_v32 = vld [vmem:[%s704_s30 + $0x180] sm:$0xff]  ;;  %v186_v33 = vld [vmem:[%s704_s30 + $0x188] sm:$0xff] }
  0x50   : > { %v187_v34 = vld [vmem:[%s704_s30 + $0x190] sm:$0xff]  ;;  %307 = vst [vmem:[%s714_s27 + $0x150] sm:$0xff] %v243_v23  ;;  %308 = vst [vmem:[%s714_s27 + $0x158] sm:$0xff] %v244_v24  ;;  %v249_v35 = vmax.f32 %v185_v32, 0.0  ;;  %v250_v36 = vmax.f32 %v186_v33, 0.0  ;;  %v188_v38 = vld [vmem:[%s704_s30 + $0x198] sm:$0xff] }
  0x51   : > { %309 = vst [vmem:[%s714_s27 + $0x160] sm:$0xff] %v245_v25  ;;  %v251_v37 = vmax.f32 %v187_v34, 0.0  ;;  %v189_v39 = vld [vmem:[%s704_s30 + $0x1a0] sm:$0xff]  ;;  %v190_v40 = vld [vmem:[%s704_s30 + $0x1a8] sm:$0xff]  ;;  %310 = vst [vmem:[%s714_s27 + $0x168] sm:$0xff] %v246_v29  ;;  %v252_v41 = vmax.f32 %v188_v38, 0.0 }
  0x52   : > { %311 = vst [vmem:[%s714_s27 + $0x170] sm:$0xff] %v247_v30  ;;  %312 = vst [vmem:[%s714_s27 + $0x178] sm:$0xff] %v248_v31  ;;  %v253_v42 = vmax.f32 %v189_v39, 0.0  ;;  %v254_v43 = vmax.f32 %v190_v40, 0.0  ;;  %v191_v44 = vld [vmem:[%s704_s30 + $0x1b0] sm:$0xff]  ;;  %v192_v45 = vld [vmem:[%s704_s30 + $0x1b8] sm:$0xff] }
  0x53   : > { %v193_v46 = vld [vmem:[%s704_s30 + $0x1c0] sm:$0xff]  ;;  %313 = vst [vmem:[%s714_s27 + $0x180] sm:$0xff] %v249_v35  ;;  %314 = vst [vmem:[%s714_s27 + $0x188] sm:$0xff] %v250_v36  ;;  %v255_v47 = vmax.f32 %v191_v44, 0.0  ;;  %v256_v48 = vmax.f32 %v192_v45, 0.0  ;;  %v194_v50 = vld [vmem:[%s704_s30 + $0x1c8] sm:$0xff] }
  0x54   : > { %315 = vst [vmem:[%s714_s27 + $0x190] sm:$0xff] %v251_v37  ;;  %v257_v49 = vmax.f32 %v193_v46, 0.0  ;;  %v195_v51 = vld [vmem:[%s704_s30 + $0x1d0] sm:$0xff]  ;;  %v196_v52 = vld [vmem:[%s704_s30 + $0x1d8] sm:$0xff]  ;;  %316 = vst [vmem:[%s714_s27 + $0x198] sm:$0xff] %v252_v41  ;;  %v258_v53 = vmax.f32 %v194_v50, 0.0 }
  0x55   : > { %317 = vst [vmem:[%s714_s27 + $0x1a0] sm:$0xff] %v253_v42  ;;  %318 = vst [vmem:[%s714_s27 + $0x1a8] sm:$0xff] %v254_v43  ;;  %v259_v54 = vmax.f32 %v195_v51, 0.0  ;;  %v260_v55 = vmax.f32 %v196_v52, 0.0  ;;  %v197_v56 = vld [vmem:[%s704_s30 + $0x1e0] sm:$0xff]  ;;  %v198_v57 = vld [vmem:[%s704_s30 + $0x1e8] sm:$0xff] }
  0x56   : > { %v199_v58 = vld [vmem:[%s704_s30 + $0x1f0] sm:$0xff]  ;;  %319 = vst [vmem:[%s714_s27 + $0x1b0] sm:$0xff] %v255_v47  ;;  %320 = vst [vmem:[%s714_s27 + $0x1b8] sm:$0xff] %v256_v48  ;;  %v261_v59 = vmax.f32 %v197_v56, 0.0  ;;  %v262_v60 = vmax.f32 %v198_v57, 0.0  ;;  %v200_v62 = vld [vmem:[%s704_s30 + $0x1f8] sm:$0xff] }
  0x57   : > { %321 = vst [vmem:[%s714_s27 + $0x1c0] sm:$0xff] %v257_v49  ;;  %v263_v61 = vmax.f32 %v199_v58, 0.0  ;;  %322 = vst [vmem:[%s714_s27 + $0x1c8] sm:$0xff] %v258_v53  ;;  %v264_v63 = vmax.f32 %v200_v62, 0.0  ;;  %s330_s10 = scalar_lea.sflag [#allocation4], %s700_s23  ;;  %s512_s3 = scalar_lea.vmem %s844_s17, 8192 }
  0x58   : > { %323 = vst [vmem:[%s714_s27 + $0x1d0] sm:$0xff] %v259_v54  ;;  %324 = vst [vmem:[%s714_s27 + $0x1d8] sm:$0xff] %v260_v55  ;;  %p513_p6 = scmp.ne.s32.totalorder %s844_s17, %s512_s3  ;;  %p903_p11 = scmp.ne.s32.totalorder %s900_s18, 0 }
  0x59   : > { %325 = vst [vmem:[%s714_s27 + $0x1e0] sm:$0xff] %v261_v59  ;;  %326 = vst [vmem:[%s714_s27 + $0x1e8] sm:$0xff] %v262_v60  ;;  %s583_s4 = smov [#allocation5]  }
  0x5a   : > { %327 = vst [vmem:[%s714_s27 + $0x1f0] sm:$0xff] %v263_v61  ;;  %328 = vst [vmem:[%s714_s27 + $0x1f8] sm:$0xff] %v264_v63  ;;  %p514_p12 = pnand %p513_p6, %p903_p11  ;;  %s516_s5 = sshll.u32 %s583_s4, 4  ;;  %s517_s5 = int_to_ptr.vmem [resolvable:$false] %s516_s5 }
  0x5b   : > { %s518_s11 = scalar_lea.vmem %s517_s5, 16384  ;;  %p519_p8 = scmp.lt.s32.totalorder %s844_s17, %s517_s5 }
  0x5c   : > { %p515_p13 = pneg %p514_p12  ;;  %p520_p10 = scmp.lt.s32.totalorder %s518_s11, %s512_s3 }
  0x5e   : > { %p521_p0 = por %p520_p10, %p519_p8 }
  0x60   : > { %p522_p2 = pnand %p521_p0, %p515_p13 }
  0x62   : > { %525 = shalt.err (!%p522_p2)
}
  0x63   : > { %s526_s13 = scalar_lea.hbm %s840_s2, 8192  ;;  %s530_s20 = scalar_lea.hbm %s896_s1, 16384 }
  0x64   : > { %p527_p4 = scmp.ne.s32.totalorder %s840_s2, %s526_s13  ;;  %p531_p9 = scmp.lt.u32.totalorder %s840_s2, %s896_s1 }
  0x65   : > { %p532_p1 = scmp.lt.u32.totalorder %s530_s20, %s526_s13  ;;  %p534_p6 = scmp.lt.u32.totalorder %s526_s13, %s840_s2 }
  0x66   : > { %p528_p5 = pnand %p527_p4, %p903_p11 }
  0x67   : > { %p533_p3 = por %p532_p1, %p531_p9 }
  0x68   : > { %p529_p7 = pneg %p528_p5 }
  0x69   : > { %p535_p12 = por %p534_p6, %p533_p3 }
  0x6b   : > { %p536_p13 = pnand %p535_p12, %p529_p7 }
  0x6d   : > { %539 = shalt.err (!%p536_p13)
}
  0x6e   : > { %s584_s24 = smov 128   ;;  %s585_s26 = smov 8  }
  0x6f   : > { %434 = dma.vmem_to_hbm [thread:$0]  (%p903_p11), %s844_s17, 8192, %s840_s2, %s330_s10, %s584_s24, %s584_s24, %s585_s26  }
  0x70 PF: > { %s358_s30 = sand.u32 1, %s566_s6   ;;  %p904_p8 = scmp.ne.s32.totalorder %s901_s19, 0 }
  0x71   : > { %p905_p10 = scmp.ge.s32.totalorder %s578_s9, 2  ;;  %s359_s25 = scalar_lea.sflag [#allocation4], %s358_s30 }
  0x73   : > { %p441_p0 = pnand %p905_p10, %p904_p8 }
  0x75   : > { %561 = dma.done.wait (!%p441_p0), %s359_s25, 8192  }
  0x76   : > { %563 = vsyncadd (!%p441_p0), %s359_s25, 4294959104  ;;  %p14_p2 = scmp.ge.s32.totalorder %s621_s12, 4   ;;  %s906_s6 = smov %s570_s7 }
  0x77   : > { %s907_s7 = smov %s574_s8  ;;  %s908_s8 = smov %s633_s15 }
  0x78   : > { %s909_s9 = smov %s621_s12  ;;  %16 = sbr.rel (!%p14_p2) target bundleno = 5 (0x5), region = 69 }
  0x7f   :  { %364 = vsyncpa [#allocation3], 1 }
  0x80   :  { %366 = vsyncpa [#allocation3 + $0x1], 1 }
  0x81   :  { %367 = vsyncpa [#allocation4], 1 }
  0x82   :  { %369 = vsyncpa [#allocation4 + $0x1], 1 }

</bundles_post_ra>
